<compile_context>
chip_gen: v6e
topology: v6e:2x2x1
jax: 0.10.0
libtpu: 0.0.40
codegen_flags: <defaults>
</compile_context>

<pallas_src>
import functools

import jax
import jax.numpy as jnp
from jax.experimental import pallas as pl
from jax.experimental.pallas import tpu as pltpu

IGNORE_INDEX = 255


def _ce_kernel(logits_ref, tgt_ref, sum_ref, cnt_ref, *,
               ignore_index, n_images, hw, bn, tp):
    i = pl.program_id(0)          # batch-block index
    j = pl.program_id(1)          # pixel-tile index

    x = logits_ref[...]           # (bn, C, tp)  native dtype (f32 or bf16)
    t = tgt_ref[...]              # (bn, 1, tp)  int32
    C = x.shape[1]

    # --- validity mask (selection only, never multiplication) -----------------
    valid = t != ignore_index                                      # (bn, 1, tp)
    if hw % tp:                   # ragged pixel tail exists (static check)
        lane = jax.lax.broadcasted_iota(jnp.int32, t.shape, 2)
        valid = jnp.logical_and(valid, (j * tp + lane) < hw)
    if n_images % bn:             # ragged batch tail exists (static check)
        img = jax.lax.broadcasted_iota(jnp.int32, t.shape, 0)
        valid = jnp.logical_and(valid, (i * bn + img) < n_images)

    # --- class-axis max and target-logit select in the native dtype (exact) ---
    m = jnp.max(x, axis=1, keepdims=True)                          # (bn, 1, tp)
    cls = jax.lax.broadcasted_iota(jnp.int32, (1, C, 1), 1)        # class ids (sublanes)
    onehot = cls == t                                              # (bn, C, tp) bool
    # at most one nonzero per pixel -> exact even in bf16
    logit_t = jnp.sum(jnp.where(onehot, x, 0),
                      axis=1, keepdims=True).astype(jnp.float32)   # (bn, 1, tp) f32

    # --- exp / sum-exp chain in f32 via a single f32 temp ----------------------
    m32 = m.astype(jnp.float32)
    xm = x.astype(jnp.float32) - m32                               # (bn, C, tp) f32
    sumexp = jnp.sum(jnp.exp(xm), axis=1, keepdims=True)           # (bn, 1, tp) f32

    loss = jnp.where(valid, m32 + jnp.log(sumexp) - logit_t, 0.0)  # (bn, 1, tp) f32

    # per-step partial reductions (cross-lane reduce lands on the XLU slot)
    sum_ref[...] = jnp.sum(loss).reshape(sum_ref.shape)
    cnt_ref[...] = jnp.sum(valid.astype(jnp.float32)).reshape(cnt_ref.shape)


def _vmem_budget():
    """Return (target block bytes per buffer, vmem_limit_bytes)."""
    try:
        kind = jax.devices()[0].device_kind.lower()
    except Exception:
        kind = ""
    if ("v5" in kind) or ("v6" in kind):
        # 128 MiB physical VMEM: big blocks, generous scoped limit
        return 12 << 20, 96 << 20
    # conservative default (covers v7x with 64 MiB VMEM and unknown parts)
    return 6 << 20, 48 << 20


def _choose_blocking(N, C, HW, itemsize, block_bytes):
    """Pick (images-per-block bn, pixel tile tp).

    The pixel tile is lane-dense (multiple of 128 or the full HW extent); if a
    single image is much smaller than the byte budget, several images are
    packed per grid step so the per-step overhead stays amortized.
    """
    bytes_per_pixel = C * itemsize + 4          # logits + int32 target
    per_image = HW * bytes_per_pixel
    if per_image >= block_bytes or N == 1:
        bn = 1
        if HW <= 128:
            tp = HW                             # full extent satisfies layout rule
        else:
            tp = block_bytes // max(bytes_per_pixel, 1)
            if tp >= HW:
                tp = HW
            else:
                tp = max(128, (tp // 128) * 128)
        return bn, tp
    bn = max(1, min(N, block_bytes // per_image))
    return bn, HW


def cross_entropy_loss_2d(output, target, *, ignore_index=IGNORE_INDEX,
                          block_bytes=None, vmem_limit_bytes=None):
    """output: (N, C, H, W) float logits; target: (N, H, W) int labels.

    Returns the scalar mean cross-entropy over pixels whose target !=
    ignore_index (NaN if every pixel is ignored, matching PyTorch).
    """
    # TODO(synk): per-class `weight` vector not implemented (module default is None).
    # TODO(synk): for tiny C, uint8 targets would cut HBM traffic further; int32
    #             is kept for layout/lowering robustness.
    N, C, H, W = output.shape
    HW = H * W

    # free reshapes -- no transpose, no pad, no dtype upcast in HBM
    logits = output.reshape(N, C, HW)
    tgt = target.reshape(N, 1, HW).astype(jnp.int32)
    itemsize = jnp.dtype(logits.dtype).itemsize

    def_bb, def_vl = _vmem_budget()
    block_bytes = block_bytes or def_bb
    vmem_limit_bytes = vmem_limit_bytes or def_vl

    bn, tp = _choose_blocking(N, C, HW, itemsize, block_bytes)
    g0 = pl.cdiv(N, bn)
    g1 = pl.cdiv(HW, tp)

    kernel = functools.partial(_ce_kernel, ignore_index=ignore_index,
                               n_images=N, hw=HW, bn=bn, tp=tp)

    loss_sum, valid_cnt = pl.pallas_call(
        kernel,
        out_shape=(
            jax.ShapeDtypeStruct((g0, g1, 1, 1), jnp.float32),
            jax.ShapeDtypeStruct((g0, g1, 1, 1), jnp.float32),
        ),
        grid_spec=pltpu.PrefetchScalarGridSpec(
            num_scalar_prefetch=0,
            grid=(g0, g1),
            in_specs=[
                pl.BlockSpec((bn, C, tp), lambda i, j: (i, 0, j)),   # logits
                pl.BlockSpec((bn, 1, tp), lambda i, j: (i, 0, j)),   # targets
            ],
            out_specs=[
                pl.BlockSpec((1, 1, 1, 1), lambda i, j: (i, j, 0, 0)),  # partial sum
                pl.BlockSpec((1, 1, 1, 1), lambda i, j: (i, j, 0, 0)),  # partial count
            ],
        ),
        compiler_params=pltpu.CompilerParams(
            dimension_semantics=("parallel", "parallel"),
            vmem_limit_bytes=vmem_limit_bytes,
        ),
    )(logits, tgt)

    # reduction='mean' with ignore_index: mean over valid pixels only
    return jnp.sum(loss_sum) / jnp.sum(valid_cnt)


def _reference(output, target, ignore_index=IGNORE_INDEX):
    # plain-JAX reference for sanity checking
    N, C, H, W = output.shape
    logits = jnp.transpose(output, (0, 2, 3, 1)).reshape(-1, C).astype(jnp.float32)
    tgt = target.reshape(-1).astype(jnp.int32)
    lse = jax.scipy.special.logsumexp(logits, axis=-1)
    safe_t = jnp.where(tgt == ignore_index, 0, tgt)
    logit_t = jnp.take_along_axis(logits, safe_t[:, None], axis=-1)[:, 0]
    valid = (tgt != ignore_index).astype(jnp.float32)
    loss = (lse - logit_t) * valid
    return jnp.sum(loss) / jnp.sum(valid)


if __name__ == "__main__":
    key = jax.random.PRNGKey(0)
    k1, k2, k3 = jax.random.split(key, 3)

    N, C, H, W = 2, 4, 16, 16
    output = jax.random.normal(k1, (N, C, H, W), dtype=jnp.float32)
    target = jax.random.randint(k2, (N, H, W), 0, C, dtype=jnp.int32)
    # sprinkle some ignore_index pixels
    ignore_mask = jax.random.bernoulli(k3, 0.1, (N, H, W))
    target = jnp.where(ignore_mask, IGNORE_INDEX, target)

    loss = cross_entropy_loss_2d(output, target)
    loss = jax.block_until_ready(loss)

    ref = _reference(output, target)
    assert jnp.allclose(loss, ref, rtol=1e-5, atol=1e-5), (loss, ref)

    print("KERNEL_OK")
</pallas_src>

<mosaic_0001>
module attributes {stable_mosaic.version = 11 : i64} {
  func.func @_ce_kernel(%arg0: i32, %arg1: i32, %arg2: memref<2x4x256xf32, #tpu.memory_space<vmem>>, %arg3: memref<2x1x256xi32, #tpu.memory_space<vmem>>, %arg4: memref<1x1x1x1xf32, #tpu.memory_space<vmem>>, %arg5: memref<1x1x1x1xf32, #tpu.memory_space<vmem>>) attributes {dimension_semantics = [#tpu.dimension_semantics<parallel>, #tpu.dimension_semantics<parallel>], iteration_bounds = array<i64: 1, 1>, scalar_prefetch = 0 : i64, scratch_operands = 0 : i64, tpu.core_type = #tpu.core_type<tc>, window_params = [{transform_indices = @transform_0, window_bounds = array<i64: 2, 4, 256>}, {transform_indices = @transform_1, window_bounds = array<i64: 2, 1, 256>}, {transform_indices = @transform_2, window_bounds = array<i64: 1, 1, 1, 1>}, {transform_indices = @transform_3, window_bounds = array<i64: 1, 1, 1, 1>}]} {
    %c0 = arith.constant 0 : index
    %c0_0 = arith.constant 0 : index
    %c0_1 = arith.constant 0 : index
    %0 = vector.load %arg2[%c0, %c0_0, %c0_1] : memref<2x4x256xf32, #tpu.memory_space<vmem>>, vector<2x4x256xf32>
    %c0_2 = arith.constant 0 : index
    %c0_3 = arith.constant 0 : index
    %c0_4 = arith.constant 0 : index
    %1 = vector.load %arg3[%c0_2, %c0_3, %c0_4] : memref<2x1x256xi32, #tpu.memory_space<vmem>>, vector<2x1x256xi32>
    %c255_i32 = arith.constant 255 : i32
    %2 = vector.broadcast %c255_i32 : i32 to vector<2x1x256xi32>
    %3 = arith.cmpi ne, %1, %2 : vector<2x1x256xi32>
    %cst = arith.constant dense<0xFF800000> : vector<2x256xf32>
    %4 = vector.multi_reduction <maximumf>, %0, %cst [1] : vector<2x4x256xf32> to vector<2x256xf32>
    %5 = vector.shape_cast %4 : vector<2x256xf32> to vector<2x1x256xf32>
    %6 = tpu.iota {dimensions = array<i32: 1>} : vector<1x4x1xi32>
    %7 = vector.broadcast %6 : vector<1x4x1xi32> to vector<2x4x256xi32>
    %8 = vector.broadcast %1 : vector<2x1x256xi32> to vector<2x4x256xi32>
    %9 = arith.cmpi eq, %7, %8 : vector<2x4x256xi32>
    %c0_i32 = arith.constant 0 : i32
    %10 = arith.sitofp %c0_i32 : i32 to f32
    %11 = vector.broadcast %10 : f32 to vector<2x4x256xf32>
    %12 = arith.select %9, %0, %11 : vector<2x4x256xi1>, vector<2x4x256xf32>
    %cst_5 = arith.constant dense<0.000000e+00> : vector<2x256xf32>
    %13 = vector.multi_reduction <add>, %12, %cst_5 [1] : vector<2x4x256xf32> to vector<2x256xf32>
    %14 = vector.shape_cast %13 : vector<2x256xf32> to vector<2x1x256xf32>
    %15 = vector.broadcast %5 : vector<2x1x256xf32> to vector<2x4x256xf32>
    %16 = arith.subf %0, %15 : vector<2x4x256xf32>
    %17 = math.exp %16 : vector<2x4x256xf32>
    %cst_6 = arith.constant dense<0.000000e+00> : vector<2x256xf32>
    %18 = vector.multi_reduction <add>, %17, %cst_6 [1] : vector<2x4x256xf32> to vector<2x256xf32>
    %19 = vector.shape_cast %18 : vector<2x256xf32> to vector<2x1x256xf32>
    %20 = math.log %19 : vector<2x1x256xf32>
    %21 = arith.addf %5, %20 : vector<2x1x256xf32>
    %22 = arith.subf %21, %14 : vector<2x1x256xf32>
    %cst_7 = arith.constant 0.000000e+00 : f32
    %23 = vector.broadcast %cst_7 : f32 to vector<2x1x256xf32>
    %24 = arith.select %3, %22, %23 : vector<2x1x256xi1>, vector<2x1x256xf32>
    %25 = vector.shape_cast %24 : vector<2x1x256xf32> to vector<1x2x1x256xf32>
    %cst_8 = arith.constant dense<0.000000e+00> : vector<1xf32>
    %26 = vector.multi_reduction <add>, %25, %cst_8 [1, 2, 3] : vector<1x2x1x256xf32> to vector<1xf32>
    %27 = vector.shape_cast %26 : vector<1xf32> to vector<1x1x1x1xf32>
    %28 = vector.extract %27[0, 0, 0, 0] : f32 from vector<1x1x1x1xf32>
    %29 = vector.broadcast %28 : f32 to vector<1x1x1x1xf32>
    %c0_9 = arith.constant 0 : index
    %c0_10 = arith.constant 0 : index
    %c0_11 = arith.constant 0 : index
    %c0_12 = arith.constant 0 : index
    %30 = vector.load %arg4[%c0_9, %c0_10, %c0_11, %c0_12] : memref<1x1x1x1xf32, #tpu.memory_space<vmem>>, vector<1x1x1x1xf32>
    tpu.vector_store %arg4[%c0_9, %c0_10, %c0_11, %c0_12], %29 {strides = array<i32>} : memref<1x1x1x1xf32, #tpu.memory_space<vmem>>, vector<1x1x1x1xf32>,
    %31 = arith.extui %3 : vector<2x1x256xi1> to vector<2x1x256xi32>
    %32 = arith.sitofp %31 : vector<2x1x256xi32> to vector<2x1x256xf32>
    %33 = vector.shape_cast %32 : vector<2x1x256xf32> to vector<1x2x1x256xf32>
    %cst_13 = arith.constant dense<0.000000e+00> : vector<1xf32>
    %34 = vector.multi_reduction <add>, %33, %cst_13 [1, 2, 3] : vector<1x2x1x256xf32> to vector<1xf32>
    %35 = vector.shape_cast %34 : vector<1xf32> to vector<1x1x1x1xf32>
    %36 = vector.extract %35[0, 0, 0, 0] : f32 from vector<1x1x1x1xf32>
    %37 = vector.broadcast %36 : f32 to vector<1x1x1x1xf32>
    %c0_14 = arith.constant 0 : index
    %c0_15 = arith.constant 0 : index
    %c0_16 = arith.constant 0 : index
    %c0_17 = arith.constant 0 : index
    %38 = vector.load %arg5[%c0_14, %c0_15, %c0_16, %c0_17] : memref<1x1x1x1xf32, #tpu.memory_space<vmem>>, vector<1x1x1x1xf32>
    tpu.vector_store %arg5[%c0_14, %c0_15, %c0_16, %c0_17], %37 {strides = array<i32>} : memref<1x1x1x1xf32, #tpu.memory_space<vmem>>, vector<1x1x1x1xf32>,
    return
  }
  func.func @transform_0(%arg0: i32, %arg1: i32) -> (i32, i32, i32) {
    %c0_i32 = arith.constant 0 : i32
    %c0_i32_0 = arith.constant 0 : i32
    return %arg0, %c0_i32, %arg1 : i32, i32, i32
  }
  func.func @transform_1(%arg0: i32, %arg1: i32) -> (i32, i32, i32) {
    %c0_i32 = arith.constant 0 : i32
    %c0_i32_0 = arith.constant 0 : i32
    return %arg0, %c0_i32, %arg1 : i32, i32, i32
  }
  func.func @transform_2(%arg0: i32, %arg1: i32) -> (i32, i32, i32, i32) {
    %c0_i32 = arith.constant 0 : i32
    %c0_i32_0 = arith.constant 0 : i32
    %c0_i32_1 = arith.constant 0 : i32
    return %arg0, %arg1, %c0_i32, %c0_i32_0 : i32, i32, i32, i32
  }
  func.func @transform_3(%arg0: i32, %arg1: i32) -> (i32, i32, i32, i32) {
    %c0_i32 = arith.constant 0 : i32
    %c0_i32_0 = arith.constant 0 : i32
    %c0_i32_1 = arith.constant 0 : i32
    return %arg0, %arg1, %c0_i32, %c0_i32_0 : i32, i32, i32, i32
  }
}

</mosaic_0001>

<bundles_post_ra>
// kernel: tpu_custom_call.1
= control target key start
LH: loop header
LB: loop body
LE: loop exit
PB: predicated region body
PF: predicated region fallthrough
CT: control target
= control target key end

     0   :  { %9 = vsyncpa [#allocation3], 0  ;;  %s639_s0 = inlined_call_operand.hbm [shape: f32[2,4,256], index: 0, kind: input, shape index: {}]   ;;  %s640_s1 = inlined_call_operand.hbm [shape: s32[2,1,256], index: 1, kind: input, shape index: {}]   ;;  %s641_s2 = inlined_call_operand.hbm [shape: f32[1,1,1,1], index: 2, kind: output, shape index: {0}]   ;;  %s642_s3 = inlined_call_operand.hbm [shape: f32[1,1,1,1], index: 3, kind: output, shape index: {1}]  }
   0x1   :  { %10 = vsyncpa [#allocation6], 0 }
   0x2   :  { %11 = vsyncpa [#allocation4], 0 }
   0x3   :  { %12 = vsyncpa [#allocation9], 0  ;;  %s474_s12 = smov [#allocation2]  }
   0x4   :  { %s18_s13 = sshll.u32 %s474_s12, 4  ;;  %s19_s13 = int_to_ptr.vmem [resolvable:$true] %s18_s13 }
   0x5   :  { %s394_s14 = scalar_lea.vmem %s19_s13, 256  ;;  %p399_p1 = scmp.lt.s32.totalorder %s19_s13, %s19_s13 }
   0x6   :  { %p395_p0 = scmp.ne.s32.totalorder %s19_s13, %s394_s14  ;;  %p400_p2 = scmp.lt.s32.totalorder %s394_s14, %s394_s14 }
   0x8   :  { %p401_p3 = por %p400_p2, %p399_p1 }
   0xa   :  { %p402_p4 = pnand %p401_p3, %p395_p0 }
   0xc   :  { %405 = shalt.err (!%p402_p4)
}
   0xd   :  { %s475_s15 = smov 128   ;;  %s476_s16 = smov 8  }
   0xe   :  { %24 = dma.hbm_to_vmem [thread:$0]  %s639_s0, 256, %s19_s13, [#allocation3], %s475_s15, %s475_s15, %s476_s16  }
   0xf   :  { %s477_s19 = smov [#allocation5]  }
  0x10   :  { %s30_s20 = sshll.u32 %s477_s19, 4  ;;  %s31_s20 = int_to_ptr.vmem [resolvable:$true] %s30_s20 }
  0x11   :  { %s414_s21 = scalar_lea.vmem %s31_s20, 64  ;;  %p419_p6 = scmp.lt.s32.totalorder %s31_s20, %s31_s20 }
  0x12   :  { %p415_p5 = scmp.ne.s32.totalorder %s31_s20, %s414_s21  ;;  %p420_p7 = scmp.lt.s32.totalorder %s414_s21, %s414_s21 }
  0x14   :  { %p421_p8 = por %p420_p7, %p419_p6 }
  0x16   :  { %p422_p9 = pnand %p421_p8, %p415_p5 }
  0x18   :  { %425 = shalt.err (!%p422_p9)
}
  0x19   :  { %s478_s22 = smov 32   ;;  %s479_s23 = smov 2  }
  0x1a   :  { %36 = dma.hbm_to_vmem [thread:$0]  %s640_s1, 64, %s31_s20, [#allocation6], %s478_s22, %s478_s22, %s479_s23  }
  0x1b   :  { %466 = dma.done.wait [#allocation3], 256  }
  0x1c   :  { %467 = vsyncadd [#allocation3], 4294967040 }
  0x1d   :  { %468 = dma.done.wait [#allocation6], 64  }
  0x1e   :  { %469 = vsyncadd [#allocation6], 4294967232  ;;  %vm55_vm0 = vcmask 1043456   ;;  %v510_v0 = vld [vmem:[#allocation2] sm:$0xff]  ;;  %v512_v1 = vld [vmem:[#allocation2 + $0x8] sm:$0xff]  ;;  %v84_v34 = vlaneseq  ;;  %vm262_vm7 = vcmask 1040384  }
  0x1f   :  { %v516_v2 = vcombine.high %v510_v0, %v510_v0  ;;  %v520_v3 = vcombine.high %v512_v1, %v512_v1  ;;  %v56_v4 = vsel %vm55_vm0, %v510_v0, -inf  ;;  %v70_v6 = vsel %vm55_vm0, %v512_v1, -inf  ;;  %v549_v41 = vld [vmem:[#allocation5] sm:$0x3]  ;;  %v551_v42 = vld [vmem:[#allocation5 + $0x2] sm:$0x3] }
  0x20   :  { %v57_v5 = vrot.slane %v56_v4, 4  ;;  %v71_v8 = vrot.slane %v70_v6, 4  ;;  %v544_v39 = vshrl.u32 %v84_v34, 7  ;;  %vm47_vm5 = vcmp.ne.s32.totalorder %v549_v41, 255  ;;  %s482_s0 = smov [#allocation7]   ;;  %s483_s27 = smov [#allocation8]  }
  0x21   :  { %v63_v7 = vsel %vm55_vm0, %v516_v2, -inf  ;;  %v77_v9 = vsel %vm55_vm0, %v520_v3, -inf  ;;  %vm48_vm6 = vcmp.ne.s32.totalorder %v551_v42, 255  ;;  %s332_s1 = sshll.u32 %s482_s0, 4  ;;  %vm280_vm8 = vcmask 0   ;;  %s342_s28 = sshll.u32 %s483_s27, 4  ;;  %s333_s1 = int_to_ptr.vmem [resolvable:$true] %s332_s1  ;;  %s343_s28 = int_to_ptr.vmem [resolvable:$true] %s342_s28 }
  0x22   :  { %v58_v10 = vmax.f32 %v56_v4, %v57_v5  ;;  %v64_v11 = vrot.slane %v63_v7, 4  ;;  %v78_v12 = vrot.slane %v77_v9, 4  ;;  %v72_v13 = vmax.f32 %v70_v6, %v71_v8  ;;  %s426_s29 = scalar_lea.vmem %s333_s1, 16  ;;  %s430_s30 = scalar_lea.vmem %s333_s1, 32 }
  0x23   :  { %v547_v40 = vsub.s32 0, %v544_v39  ;;  %v554_v43 = vsub.s32 1, %v544_v39  ;;  %p427_p10 = scmp.ne.s32.totalorder %s333_s1, %s426_s29  ;;  %p431_p11 = scmp.lt.s32.totalorder %s333_s1, %s333_s1 }
  0x24   :  { %v59_v14 = vrot.slane %v58_v10, 2  ;;  %v65_v15 = vmax.f32 %v63_v7, %v64_v11  ;;  %v79_v16 = vmax.f32 %v77_v9, %v78_v12  ;;  %v73_v17 = vrot.slane %v72_v13, 2  ;;  %p432_p12 = scmp.lt.s32.totalorder %s430_s30, %s426_s29 }
  0x25   :  { %v89_v44 = vrot.slane %v549_v41, %v547_v40  ;;  %v97_v45 = vrot.slane %v551_v42, %v547_v40  ;;  %v93_v46 = vrot.slane %v549_v41, %v554_v43  ;;  %v101_v47 = vrot.slane %v551_v42, %v554_v43 }
  0x26   :  { %v60_v18 = vmax.f32 %v58_v10, %v59_v14  ;;  %v66_v19 = vrot.slane %v65_v15, 2  ;;  %v80_v20 = vrot.slane %v79_v16, 2  ;;  %v74_v21 = vmax.f32 %v72_v13, %v73_v17  ;;  %p433_p13 = por %p432_p12, %p431_p11 }
  0x27   :  { %vm565_vm1 = vcmp.eq.s32.totalorder %v544_v39, %v89_v44  ;;  %vm570_vm2 = vcmp.eq.s32.totalorder %v544_v39, %v97_v45  ;;  %vm575_vm3 = vcmp.eq.s32.totalorder %v544_v39, %v93_v46  ;;  %vm580_vm4 = vcmp.eq.s32.totalorder %v544_v39, %v101_v47 }
  0x28   :  { %v61_v22 = vrot.slane %v60_v18, 1  ;;  %v67_v23 = vmax.f32 %v65_v15, %v66_v19  ;;  %v81_v24 = vmax.f32 %v79_v16, %v80_v20  ;;  %v75_v25 = vrot.slane %v74_v21, 1  ;;  %p434_p0 = pnand %p433_p13, %p427_p10 }
  0x29   :  { %v106_v56 = vsel %vm565_vm1, %v510_v0, 0.0  ;;  %v108_v60 = vsel %vm570_vm2, %v512_v1, 0.0  ;;  %v107_v63 = vsel %vm575_vm3, %v516_v2, 0.0 }
  0x2a   :  { %v530_v26 = vmax.f32 %v60_v18, %v61_v22  ;;  %v68_v27 = vrot.slane %v67_v23, 1  ;;  %v82_v28 = vrot.slane %v81_v24, 1  ;;  %v532_v29 = vmax.f32 %v74_v21, %v75_v25 }
  0x2b   :  { %v110_v7 = vsel %vm55_vm0, %v106_v56, 0.0  ;;  %v117_v12 = vsel %vm55_vm0, %v107_v63, 0.0  ;;  %v480_v56 = vmov 1966171168  }
  0x2c   :  { %v534_v30 = vmax.f32 %v67_v23, %v68_v27  ;;  %v536_v31 = vmax.f32 %v81_v24, %v82_v28  ;;  %v111_v14 = vrot.slane %v110_v7, 4  ;;  %v118_v20 = vrot.slane %v117_v12, 4 }
  0x2e   :  { %v142_v32 = vcombine.low %v530_v26, %v534_v30  ;;  %v143_v33 = vcombine.low %v532_v29, %v536_v31  ;;  %v112_v27 = vadd.f32 %v111_v14, %v110_v7 }
  0x30   :  { %v146_v35 = vsub.f32 %v510_v0, %v142_v32  ;;  %v147_v36 = vsub.f32 %v512_v1, %v143_v33  ;;  %v109_v0 = vsel %vm580_vm4, %v520_v3, 0.0  ;;  %v124_v1 = vsel %vm55_vm0, %v108_v60, 0.0 }
  0x31   :  { %v131_v15 = vsel %vm55_vm0, %v109_v0, 0.0  ;;  %v125_v18 = vrot.slane %v124_v1, 4  ;;  %v113_v45 = vrot.slane %v112_v27, 2 }
  0x32   :  { %v148_v37 = vmul.f32 1.442695, %v146_v35  ;;  %v150_v38 = vmul.f32 1.442695, %v147_v36  ;;  %v132_v23 = vrot.slane %v131_v15, 4  ;;  %v119_v36 = vadd.f32 %v118_v20, %v117_v12 }
  0x33   :  { %v126_v33 = vadd.f32 %v125_v18, %v124_v1 }
  0x34   :  { %374 = vpow2.f32 %v148_v37  ;;  %v120_v47 = vrot.slane %v119_v36, 2 }
  0x35   :  { %376 = vpow2.f32 %v150_v38  ;;  %v133_v38 = vadd.f32 %v132_v23, %v131_v15  ;;  %v127_v46 = vrot.slane %v126_v33, 2 }
  0x37   :  { %v134_v48 = vrot.slane %v133_v38, 2  ;;  %v128_v50 = vadd.f32 %v127_v46, %v126_v33 }
  0x39   :  { %v135_v52 = vadd.f32 %v134_v48, %v133_v38 }
  0x41   :  { %v375_v49 = vpop.eup %374 }
  0x42   :  { %v377_v51 = vpop.eup %376  ;;  %v154_v54 = vcombine.high %v375_v49, %v375_v49  ;;  %v158_v55 = vsel %vm55_vm0, %v375_v49, 0.0  ;;  %v114_v49 = vadd.f32 %v113_v45, %v112_v27 }
  0x43   :  { %v155_v57 = vcombine.high %v377_v51, %v377_v51  ;;  %v159_v58 = vrot.slane %v158_v55, 4  ;;  %v172_v59 = vsel %vm55_vm0, %v377_v51, 0.0  ;;  %v121_v51 = vadd.f32 %v120_v47, %v119_v36 }
  0x44   :  { %v165_v61 = vsel %vm55_vm0, %v154_v54, 0.0  ;;  %v173_v62 = vrot.slane %v172_v59, 4  ;;  %v115_v53 = vrot.slane %v114_v49, 1  ;;  %v129_v54 = vrot.slane %v128_v50, 1 }
  0x45   :  { %v160_v4 = vadd.f32 %v159_v58, %v158_v55  ;;  %v166_v5 = vrot.slane %v165_v61, 4  ;;  %v179_v6 = vsel %vm55_vm0, %v155_v57, 0.0  ;;  %v122_v55 = vrot.slane %v121_v51, 1 }
  0x46   :  { %v174_v8 = vadd.f32 %v173_v62, %v172_v59  ;;  %v180_v9 = vrot.slane %v179_v6, 4  ;;  %v208_v57 = vunpack.c.l.s4 %v480_v56  ;;  %v136_v59 = vrot.slane %v135_v52, 1 }
  0x47   :  { %v161_v10 = vrot.slane %v160_v4, 2  ;;  %v167_v11 = vadd.f32 %v166_v5, %v165_v61  ;;  %v116_v61 = vadd.f32 %v115_v53, %v114_v49  ;;  %v123_v0 = vadd.f32 %v122_v55, %v121_v51 }
  0x48   :  { %v175_v13 = vrot.slane %v174_v8, 2  ;;  %v181_v2 = vadd.f32 %v180_v9, %v179_v6  ;;  %v209_v9 = vunpack.c.0.s8 %v208_v57  ;;  %v137_v1 = vadd.f32 %v136_v59, %v135_v52 }
  0x49   :  { %v162_v16 = vadd.f32 %v161_v10, %v160_v4  ;;  %v168_v17 = vrot.slane %v167_v11, 2  ;;  %v130_v4 = vadd.f32 %v129_v54, %v128_v50 }
  0x4a   :  { %v176_v19 = vadd.f32 %v175_v13, %v174_v8  ;;  %v182_v3 = vrot.slane %v181_v2, 2 }
  0x4b   :  { %v163_v21 = vrot.slane %v162_v16, 1  ;;  %v169_v22 = vadd.f32 %v168_v17, %v167_v11  ;;  %v481_v17 = vmov 0.0  }
  0x4c   :  { %v177_v24 = vrot.slane %v176_v19, 1  ;;  %v183_v25 = vadd.f32 %v182_v3, %v181_v2 }
  0x4d   :  { %v164_v28 = vadd.f32 %v163_v21, %v162_v16  ;;  %v170_v32 = vrot.slane %v169_v22, 1  ;;  %v212_v16 = vsub.s32 %v209_v9, %v544_v39  ;;  %v357_v21 = vsel %vm48_vm6, 1.0, %v481_v17 }
  0x4e   :  { %v178_v34 = vadd.f32 %v177_v24, %v176_v19  ;;  %v184_v35 = vrot.slane %v183_v25, 1  ;;  %v299_v39 = vrot.slane %v357_v21, %v547_v40  ;;  %v303_v38 = vrot.slane %v357_v21, %v554_v43 }
  0x4f   :  { %v171_v37 = vadd.f32 %v170_v32, %v169_v22  ;;  %378 = vlog2.f32 %v164_v28 }
  0x50   :  { %v185_v44 = vadd.f32 %v184_v35, %v183_v25  ;;  %380 = vlog2.f32 %v178_v34 }
  0x51   :  { %382 = vlog2.f32 %v171_v37 }
  0x52   :  { %384 = vlog2.f32 %v185_v44  ;;  %v311_v44 = vsel %vm262_vm7, %v299_v39, 0.0 }
  0x5c   :  { %v379_v58 = vpop.eup %378 }
  0x5d   :  { %v381_v60 = vpop.eup %380  ;;  %v187_v62 = vmul.f32 0.6931472, %v379_v58 }
  0x5e   :  { %v383_v63 = vpop.eup %382  ;;  %v191_v5 = vmul.f32 0.6931472, %v381_v60 }
  0x5f   :  { %v385_v6 = vpop.eup %384  ;;  %v189_v7 = vmul.f32 0.6931472, %v383_v63  ;;  %v194_v8 = vadd.f32 %v187_v62, %v530_v26  ;;  %v356_v26 = vsel %vm47_vm5, 1.0, %v481_v17 }
  0x60   :  { %v193_v10 = vmul.f32 0.6931472, %v385_v6  ;;  %v196_v11 = vadd.f32 %v191_v5, %v532_v29  ;;  %v295_v3 = vrot.slane %v356_v26, %v554_v43 }
  0x61   :  { %v195_v12 = vadd.f32 %v189_v7, %v534_v30  ;;  %v198_v13 = vsub.f32 %v194_v8, %v116_v61  ;;  %v291_v30 = vrot.slane %v356_v26, %v547_v40 }
  0x62   :  { %v197_v2 = vadd.f32 %v193_v10, %v536_v31  ;;  %v200_v14 = vsub.f32 %v196_v11, %v130_v4  ;;  %v309_v25 = vsel %vm262_vm7, %v295_v3, 0.0 }
  0x63   :  { %v199_v15 = vsub.f32 %v195_v12, %v123_v0  ;;  %v308_v24 = vsel %vm262_vm7, %v291_v30, 0.0 }
  0x64   :  { %v201_v18 = vsub.f32 %v197_v2, %v137_v1  ;;  %v310_v35 = vadd.f32 %v309_v25, %v308_v24 }
  0x65   :  { %v206_v19 = vcombine.low %v198_v13, %v199_v15 }
  0x66   :  { %v221_v29 = vcombine.low %v200_v14, %v201_v18  ;;  %v312_v48 = vadd.f32 %v311_v44, %v310_v35 }
  0x67   :  { %v213_v20 = vrot.slane %v206_v19, %v212_v16 }
  0x68   :  { %v228_v31 = vrot.slane %v221_v29, %v212_v16 }
  0x69   :  { %v220_v22 = vrot.slane %v213_v20, %v212_v16 }
  0x6a   :  { %v235_v23 = vrot.slane %v228_v31, %v212_v16 }
  0x6b   :  { %v238_v42 = vsel %vm47_vm5, %v220_v22, 0.0 }
  0x6c   :  { %v239_v27 = vsel %vm48_vm6, %v235_v23, 0.0  ;;  %v245_v28 = vrot.slane %v238_v42, %v547_v40  ;;  %v249_v32 = vrot.slane %v238_v42, %v554_v43 }
  0x6d   :  { %v253_v33 = vrot.slane %v239_v27, %v547_v40  ;;  %v257_v34 = vrot.slane %v239_v27, %v554_v43  ;;  %v313_v40 = vsel %vm262_vm7, %v303_v38, 0.0 }
  0x6e   :  { %v263_v36 = vsel %vm262_vm7, %v245_v28, 0.0  ;;  %v264_v37 = vsel %vm262_vm7, %v249_v32, 0.0  ;;  %v314_v50 = vadd.f32 %v313_v40, %v312_v48 }
  0x6f   :  { %v265_v41 = vadd.f32 %v264_v37, %v263_v36  ;;  %v266_v45 = vsel %vm262_vm7, %v253_v33, 0.0  ;;  %v268_v46 = vsel %vm262_vm7, %v257_v34, 0.0 }
  0x71   :  { %v267_v47 = vadd.f32 %v266_v45, %v265_v41 }
  0x73   :  { %v269_v49 = vadd.f32 %v268_v46, %v267_v47 }
  0x75   :  { %270 = vadd.xlane.f32.xlu0 %v269_v49 }
  0x79   :  { %315 = vadd.xlane.f32.xlu0 %v314_v50 }
  0xfe   :  { %v271_v51 = vpop.xlane.xlu0 %270 }
  0xff   :  { %v272_v52 = vrot.slane %v271_v51, 4 }
 0x101   :  { %v273_v53 = vadd.f32 %v272_v52, %v271_v51 }
 0x102   :  { %v316_v54 = vpop.xlane.xlu0 %315 }
 0x103   :  { %v274_v43 = vrot.slane %v273_v53, 2  ;;  %v317_v55 = vrot.slane %v316_v54, 4 }
 0x105   :  { %v318_v56 = vadd.f32 %v317_v55, %v316_v54  ;;  %v275_v57 = vadd.f32 %v274_v43, %v273_v53 }
 0x107   :  { %v319_v58 = vrot.slane %v318_v56, 2  ;;  %v276_v59 = vrot.slane %v275_v57, 1 }
 0x109   :  { %v320_v60 = vadd.f32 %v319_v58, %v318_v56  ;;  %v277_v61 = vadd.f32 %v276_v59, %v275_v57 }
 0x10b   :  { %358 = vpush %v277_v61  ;;  %v321_v62 = vrot.slane %v320_v60, 1 }
 0x10d   :  { %v322_v63 = vadd.f32 %v321_v62, %v320_v60 }
 0x10f   :  { %360 = vpush %v322_v63 }
 0x13c   :  { %s359_s26 = spop %358 }
 0x13d   :  { %v279_v4 = vstv %s359_s26 }
 0x13e   :  { %281 = vst.msk [vmem:[#allocation7] sm:$0x1] %vm280_vm8, %v279_v4 }
 0x13f   :  { %437 = shalt.err (!%p434_p0)
}
 0x140   :  { %335 = dma.vmem_to_hbm [thread:$0]  %s333_s1, 16, %s641_s2, [#allocation4]  }
 0x141   :  { %s361_s6 = spop %360  ;;  %s446_s7 = scalar_lea.vmem %s343_s28, 16 }
 0x142   :  { %v324_v5 = vstv %s361_s6  ;;  %p447_p1 = scmp.ne.s32.totalorder %s343_s28, %s446_s7  ;;  %s450_s8 = scalar_lea.vmem %s343_s28, 32 }
 0x143   :  { %325 = vst.msk [vmem:[#allocation8] sm:$0x1] %vm280_vm8, %v324_v5  ;;  %p451_p2 = scmp.lt.s32.totalorder %s343_s28, %s343_s28  ;;  %p452_p3 = scmp.lt.s32.totalorder %s450_s8, %s446_s7 }
 0x145   :  { %p453_p4 = por %p452_p3, %p451_p2 }
 0x147   :  { %p454_p5 = pnand %p453_p4, %p447_p1 }
 0x149   :  { %457 = shalt.err (!%p454_p5)
}
 0x14a   :  { %345 = dma.vmem_to_hbm [thread:$0]  %s343_s28, 16, %s642_s3, [#allocation9]  }
 0x14b   :  { %470 = dma.done.wait [#allocation4], 16  }
 0x14c   :  { %471 = vsyncadd [#allocation4], 4294967280 }
 0x14d   :  { %472 = dma.done.wait [#allocation9], 16  }
 0x14e   :  { %473 = vsyncadd [#allocation9], 4294967280 }
 0x14f   :  { %352 = vsyncpa [#allocation3], 1 }
 0x150   :  { %353 = vsyncpa [#allocation6], 1 }
 0x151   :  { %354 = vsyncpa [#allocation4], 1 }
 0x152   :  { %355 = vsyncpa [#allocation9], 1 }

</bundles_post_ra>
